<compile_context>
chip_gen: v6e
topology: v6e:2x2x1
jax: 0.10.0
libtpu: 0.0.40
codegen_flags: <defaults>
</compile_context>

<pallas_src>
import functools

import jax
import jax.numpy as jnp
from jax.experimental import pallas as pl
from jax.experimental.pallas import tpu as pltpu


def _round_up(x, m):
    return ((x + m - 1) // m) * m


# --------------------------------------------------------------------------- #
# Kernel
# --------------------------------------------------------------------------- #
def _noisenet_kernel(x_ref, slab_ref, out_ref, *, Hp, L1, L2, K):
    """x: (Bt, Hp).  slab: packed params (see pack_noisenet_params).
    out: (Bt, L2) lane-dense, packed as [means | log_sigma2s | weights | 0-pad].
    """
    r_b1 = Hp
    r_w2 = Hp + 8
    r_b2 = Hp + 8 + L1

    x = x_ref[...]
    # Static sub-views into the single parameter slab (zero-cost slicing).
    w1 = slab_ref[0:Hp, 0:L1]              # (Hp, L1)  fused fc1 weights
    b1 = slab_ref[r_b1:r_b1 + 1, 0:L1]     # (1,  L1)
    w2 = slab_ref[r_w2:r_w2 + L1, 0:L2]    # (L1, L2)  block-diagonal fc2
    b2 = slab_ref[r_b2:r_b2 + 1, 0:L2]     # (1,  L2)

    # Fused fc1 (all three branches) + ReLU: one MXU push, one VPU max.
    h = jnp.dot(x, w1, preferred_element_type=jnp.float32) + b1
    h = jnp.maximum(h, 0.0)

    # Fused (block-diagonal) fc2: one MXU push -> packed (Bt, L2) logits slab.
    logits = jnp.dot(h, w2, preferred_element_type=jnp.float32) + b2

    # Numerically-stable softmax over the weight columns only (torch dim=1).
    # Two-sided mask so the zero-padded lane columns cannot enter the softmax.
    col = jax.lax.broadcasted_iota(jnp.int32, logits.shape, 1)
    is_w = (col >= 2 * K) & (col < 3 * K)
    masked = jnp.where(is_w, logits, -jnp.inf)
    m = jnp.max(masked, axis=-1, keepdims=True)
    e = jnp.exp(masked - m)                      # non-weight cols -> exp(-inf) = 0
    denom = jnp.sum(e, axis=-1, keepdims=True)
    weights = e / denom                          # EXACT divide (weights sum to 1)

    out_ref[...] = jnp.where(is_w, weights, logits).astype(out_ref.dtype)


# --------------------------------------------------------------------------- #
# One-time parameter packing (hoisted out of the per-call path)
# --------------------------------------------------------------------------- #
_BRANCHES = ("mean", "sigma", "weight")


def pack_noisenet_params(params, dtype=jnp.float32):
    """Fuse the 6 nn.Linear layers into ONE contiguous slab.

    Slab layout (rows, W), W = max(L1, L2), everything else zero:
      rows [0, Hp)            : w1  (H, 3H) -> padded to (Hp, L1)   (transposed)
      row  Hp                 : b1  (3H,)   -> padded to L1
      rows [Hp+8, Hp+8+L1)    : w2  block-diag (3H, 3K) -> (L1, L2) (transposed)
      row  Hp+8+L1            : b2  (3K,)   -> padded to L2
    Hp = H rounded up to 8 (sublane), L1 = 3H rounded up to 128 (lane),
    L2 = 3K rounded up to 128 (lane-dense output width).
    """
    H = params["fc1_mean_w"].shape[1]
    K = params["fc2_mean_w"].shape[0]
    Hp = _round_up(H, 8)
    L1 = _round_up(3 * H, 128)
    L2 = _round_up(3 * K, 128)
    W = max(L1, L2)

    w1 = jnp.concatenate(
        [jnp.asarray(params[f"fc1_{n}_w"], dtype).T for n in _BRANCHES], axis=1)   # (H, 3H)
    b1 = jnp.concatenate(
        [jnp.asarray(params[f"fc1_{n}_b"], dtype) for n in _BRANCHES])              # (3H,)
    w2 = jax.scipy.linalg.block_diag(
        *[jnp.asarray(params[f"fc2_{n}_w"], dtype).T for n in _BRANCHES])           # (3H, 3K)
    b2 = jnp.concatenate(
        [jnp.asarray(params[f"fc2_{n}_b"], dtype) for n in _BRANCHES])               # (3K,)

    rows = Hp + 8 + L1 + 8
    slab = jnp.zeros((rows, W), dtype)
    slab = slab.at[0:H, 0:3 * H].set(w1)
    slab = slab.at[Hp, 0:3 * H].set(b1)
    slab = slab.at[Hp + 8:Hp + 8 + 3 * H, 0:3 * K].set(w2)
    slab = slab.at[Hp + 8 + L1, 0:3 * K].set(b2)

    return {"slab": slab, "H": H, "K": K, "Hp": Hp, "L1": L1, "L2": L2}


# --------------------------------------------------------------------------- #
# Wrapper
# --------------------------------------------------------------------------- #
def noisenet_forward(x, packed, *, batch_tile=512):
    """x: (B, H).  packed: output of pack_noisenet_params.

    Returns (means, log_sigma2s, weights), each (B, K).
    """
    H, K = int(packed["H"]), int(packed["K"])
    Hp, L1, L2 = int(packed["Hp"]), int(packed["L1"]), int(packed["L2"])
    slab = packed["slab"]

    B = x.shape[0]
    x = x.astype(jnp.float32)
    if H != Hp:                                      # only for sublane-unaligned H
        x = jnp.pad(x, ((0, 0), (0, Hp - H)))

    kernel = functools.partial(_noisenet_kernel, Hp=Hp, L1=L1, L2=L2, K=K)
    vmem_spec = pl.BlockSpec(memory_space=pltpu.MemorySpace.VMEM)
    cost = pl.CostEstimate(
        flops=2 * B * (Hp * L1 + L1 * L2),
        transcendentals=B * L2,
        bytes_accessed=4 * (B * Hp + slab.size + B * L2),
    )

    if B <= batch_tile:
        # Small / moderate batch: no grid, whole arrays VMEM-resident,
        # exactly 2 input DMAs (x + packed param slab) and 1 output DMA.
        out = pl.pallas_call(
            kernel,
            out_shape=jax.ShapeDtypeStruct((B, L2), jnp.float32),
            in_specs=[vmem_spec, vmem_spec],
            out_specs=vmem_spec,
            cost_estimate=cost,
        )(x, slab)
    else:
        # Large batch: 1-D batch grid; parameter slab stays VMEM-resident via a
        # constant index_map; batch axis marked "parallel" (2 TCs on v7x).
        Bp = _round_up(B, batch_tile)
        if Bp != B:
            x = jnp.pad(x, ((0, Bp - B), (0, 0)))
        out = pl.pallas_call(
            kernel,
            out_shape=jax.ShapeDtypeStruct((Bp, L2), jnp.float32),
            grid=(Bp // batch_tile,),
            in_specs=[
                pl.BlockSpec((batch_tile, Hp), lambda i: (i, 0)),
                pl.BlockSpec(slab.shape, lambda i: (0, 0)),
            ],
            out_specs=pl.BlockSpec((batch_tile, L2), lambda i: (i, 0)),
            compiler_params=pltpu.CompilerParams(
                dimension_semantics=("parallel",)),
            cost_estimate=cost,
        )(x, slab)
        out = out[:B]

    means = out[:, :K]
    log_sigma2s = out[:, K:2 * K]
    weights = out[:, 2 * K:3 * K]
    return means, log_sigma2s, weights


# --------------------------------------------------------------------------- #
# Pure-JAX reference (matches torch semantics)
# --------------------------------------------------------------------------- #
def _reference_forward(x, params):
    def linear(v, w, b):
        return v @ jnp.asarray(w, jnp.float32).T + jnp.asarray(b, jnp.float32)

    h = jax.nn.relu(linear(x, params["fc1_mean_w"], params["fc1_mean_b"]))
    means = linear(h, params["fc2_mean_w"], params["fc2_mean_b"])
    h = jax.nn.relu(linear(x, params["fc1_sigma_w"], params["fc1_sigma_b"]))
    log_sigma2s = linear(h, params["fc2_sigma_w"], params["fc2_sigma_b"])
    h = jax.nn.relu(linear(x, params["fc1_weight_w"], params["fc1_weight_b"]))
    logits = linear(h, params["fc2_weight_w"], params["fc2_weight_b"])
    weights = jax.nn.softmax(logits, axis=1)
    return means, log_sigma2s, weights


def _init_params(key, hidden_dim, K):
    """Deterministic init mirroring nn.Linear shapes: W (out, in), b (out,)."""
    names_shapes = [
        ("fc1_mean", hidden_dim, hidden_dim), ("fc2_mean", K, hidden_dim),
        ("fc1_sigma", hidden_dim, hidden_dim), ("fc2_sigma", K, hidden_dim),
        ("fc1_weight", hidden_dim, hidden_dim), ("fc2_weight", K, hidden_dim),
    ]
    params = {}
    for name, out_f, in_f in names_shapes:
        key, kw, kb = jax.random.split(key, 3)
        bound = 1.0 / jnp.sqrt(in_f)
        params[f"{name}_w"] = jax.random.uniform(
            kw, (out_f, in_f), jnp.float32, -bound, bound)
        params[f"{name}_b"] = jax.random.uniform(
            kb, (out_f,), jnp.float32, -bound, bound)
    return params


def _check(x, params, packed, **kw):
    means, log_sigma2s, weights = noisenet_forward(x, packed, **kw)
    jax.block_until_ready((means, log_sigma2s, weights))
    r_means, r_logsig, r_weights = _reference_forward(x, params)
    assert jnp.allclose(means, r_means, atol=1e-4, rtol=1e-4)
    assert jnp.allclose(log_sigma2s, r_logsig, atol=1e-4, rtol=1e-4)
    assert jnp.allclose(weights, r_weights, atol=5e-5, rtol=1e-4)
    assert jnp.allclose(jnp.sum(weights, axis=1), 1.0, atol=1e-5)


if __name__ == "__main__":
    H, K = 32, 4  # hidden_dim, mixture components

    key = jax.random.PRNGKey(0)
    key, kx1, kx2 = jax.random.split(key, 3)
    params = _init_params(key, H, K)
    packed = pack_noisenet_params(params)           # one-time fusion/packing

    # Small-batch path (no grid, 2 input DMAs).
    x_small = jax.random.normal(kx1, (8, H), jnp.float32)
    _check(x_small, params, packed)

    # Large-batch path (1-D batch grid, resident params, batch not a tile multiple).
    x_big = jax.random.normal(kx2, (300, H), jnp.float32)
    _check(x_big, params, packed, batch_tile=128)

    print("KERNEL_OK")
</pallas_src>

<mosaic_0001>
module attributes {stable_mosaic.version = 11 : i64} {
  func.func @_noisenet_kernel(%arg0: memref<8x32xf32, #tpu.memory_space<vmem>>, %arg1: memref<176x128xf32, #tpu.memory_space<vmem>>, %arg2: memref<8x128xf32, #tpu.memory_space<vmem>>) attributes {dimension_semantics = [], scalar_prefetch = 0 : i64, scratch_operands = 0 : i64, tpu.core_type = #tpu.core_type<tc>} {
    %c0 = arith.constant 0 : index
    %c0_0 = arith.constant 0 : index
    %0 = vector.load %arg0[%c0, %c0_0] : memref<8x32xf32, #tpu.memory_space<vmem>>, vector<8x32xf32>
    %c0_1 = arith.constant 0 : index
    %c0_2 = arith.constant 0 : index
    %1 = vector.load %arg1[%c0_1, %c0_2] : memref<176x128xf32, #tpu.memory_space<vmem>>, vector<32x128xf32>
    %c32 = arith.constant 32 : index
    %c0_3 = arith.constant 0 : index
    %2 = vector.load %arg1[%c32, %c0_3] : memref<176x128xf32, #tpu.memory_space<vmem>>, vector<1x128xf32>
    %c40 = arith.constant 40 : index
    %c0_4 = arith.constant 0 : index
    %3 = vector.load %arg1[%c40, %c0_4] : memref<176x128xf32, #tpu.memory_space<vmem>>, vector<128x128xf32>
    %c168 = arith.constant 168 : index
    %c0_5 = arith.constant 0 : index
    %4 = vector.load %arg1[%c168, %c0_5] : memref<176x128xf32, #tpu.memory_space<vmem>>, vector<1x128xf32>
    %cst = arith.constant dense<0.000000e+00> : vector<8x128xf32>
    %5 = tpu.matmul %0, %1, %cst {dimension_numbers = #tpu.dot_dimension_numbers<[1], [0], [0], [1], [0, 0, 1, 1], [], []>} : vector<8x32xf32>, vector<32x128xf32>, vector<8x128xf32> -> vector<8x128xf32>
    %6 = vector.broadcast %2 : vector<1x128xf32> to vector<8x128xf32>
    %7 = arith.addf %5, %6 : vector<8x128xf32>
    %cst_6 = arith.constant 0.000000e+00 : f32
    %8 = vector.broadcast %cst_6 : f32 to vector<8x128xf32>
    %9 = arith.maximumf %7, %8 : vector<8x128xf32>
    %cst_7 = arith.constant dense<0.000000e+00> : vector<8x128xf32>
    %10 = tpu.matmul %9, %3, %cst_7 {dimension_numbers = #tpu.dot_dimension_numbers<[1], [0], [0], [1], [0, 0, 1, 1], [], []>} : vector<8x128xf32>, vector<128x128xf32>, vector<8x128xf32> -> vector<8x128xf32>
    %11 = vector.broadcast %4 : vector<1x128xf32> to vector<8x128xf32>
    %12 = arith.addf %10, %11 : vector<8x128xf32>
    %13 = tpu.iota {dimensions = array<i32: 1>} : vector<8x128xi32>
    %c8_i32 = arith.constant 8 : i32
    %14 = vector.broadcast %c8_i32 : i32 to vector<8x128xi32>
    %15 = arith.cmpi sge, %13, %14 : vector<8x128xi32>
    %c12_i32 = arith.constant 12 : i32
    %16 = vector.broadcast %c12_i32 : i32 to vector<8x128xi32>
    %17 = arith.cmpi slt, %13, %16 : vector<8x128xi32>
    %18 = arith.andi %15, %17 : vector<8x128xi1>
    %cst_8 = arith.constant 0xFF800000 : f32
    %19 = vector.broadcast %cst_8 : f32 to vector<8x128xf32>
    %20 = arith.select %18, %12, %19 : vector<8x128xi1>, vector<8x128xf32>
    %cst_9 = arith.constant dense<0xFF800000> : vector<8xf32>
    %21 = vector.multi_reduction <maximumf>, %20, %cst_9 [1] : vector<8x128xf32> to vector<8xf32>
    %22 = vector.shape_cast %21 : vector<8xf32> to vector<8x1xf32>
    %23 = vector.broadcast %22 : vector<8x1xf32> to vector<8x128xf32>
    %24 = arith.subf %20, %23 : vector<8x128xf32>
    %25 = math.exp %24 : vector<8x128xf32>
    %cst_10 = arith.constant dense<0.000000e+00> : vector<8xf32>
    %26 = vector.multi_reduction <add>, %25, %cst_10 [1] : vector<8x128xf32> to vector<8xf32>
    %27 = vector.shape_cast %26 : vector<8xf32> to vector<8x1xf32>
    %28 = vector.broadcast %27 : vector<8x1xf32> to vector<8x128xf32>
    %29 = arith.divf %25, %28 : vector<8x128xf32>
    %30 = arith.select %18, %29, %12 : vector<8x128xi1>, vector<8x128xf32>
    %c0_11 = arith.constant 0 : index
    %c0_12 = arith.constant 0 : index
    %31 = vector.load %arg2[%c0_11, %c0_12] : memref<8x128xf32, #tpu.memory_space<vmem>>, vector<8x128xf32>
    tpu.vector_store %arg2[%c0_11, %c0_12], %30 {strides = array<i32>} : memref<8x128xf32, #tpu.memory_space<vmem>>, vector<8x128xf32>,
    return
  }
}

</mosaic_0001>

<bundles_post_ra>
// kernel: tpu_custom_call.1
= control target key start
LH: loop header
LB: loop body
LE: loop exit
PB: predicated region body
PF: predicated region fallthrough
CT: control target
= control target key end

     0   :  { %7 = vsyncpa [#allocation3], 0  ;;  %s456_s0 = inlined_call_operand.hbm [shape: f32[8,32], index: 0, kind: input, shape index: {}]   ;;  %s457_s1 = inlined_call_operand.hbm [shape: f32[176,128], index: 1, kind: input, shape index: {}]   ;;  %s458_s2 = inlined_call_operand.hbm [shape: f32[8,128], index: 2, kind: output, shape index: {}]  }
   0x1   :  { %8 = vsyncpa [#allocation6], 0 }
   0x2   :  { %9 = vsyncpa [#allocation4], 0  ;;  %s395_s9 = smov [#allocation2]   ;;  %s396_s11 = smov [#allocation5]  }
   0x3   :  { %s16_s10 = sshll.u32 %s395_s9, 4  ;;  %s25_s12 = sshll.u32 %s396_s11, 4  ;;  %s17_s10 = int_to_ptr.vmem [resolvable:$true] %s16_s10  ;;  %s26_s12 = int_to_ptr.vmem [resolvable:$true] %s25_s12 }
   0x4   :  { %s337_s13 = scalar_lea.vmem %s17_s10, 128  ;;  %p342_p1 = scmp.lt.s32.totalorder %s17_s10, %s17_s10 }
   0x5   :  { %p338_p0 = scmp.ne.s32.totalorder %s17_s10, %s337_s13  ;;  %p343_p2 = scmp.lt.s32.totalorder %s337_s13, %s337_s13 }
   0x7   :  { %p344_p3 = por %p343_p2, %p342_p1 }
   0x9   :  { %p345_p4 = pnand %p344_p3, %p338_p0 }
   0xb   :  { %348 = shalt.err (!%p345_p4)
}
   0xc   :  { %19 = dma.hbm_to_vmem [thread:$0]  %s456_s0, 128, %s17_s10, [#allocation3]  }
   0xd   :  { %s357_s16 = scalar_lea.vmem %s26_s12, 2816  ;;  %p362_p6 = scmp.lt.s32.totalorder %s26_s12, %s26_s12 }
   0xe   :  { %p358_p5 = scmp.ne.s32.totalorder %s26_s12, %s357_s16  ;;  %p363_p7 = scmp.lt.s32.totalorder %s357_s16, %s357_s16 }
  0x10   :  { %p364_p8 = por %p363_p7, %p362_p6 }
  0x12   :  { %p365_p9 = pnand %p364_p8, %p358_p5 }
  0x14   :  { %368 = shalt.err (!%p365_p9)
}
  0x15   :  { %s397_s17 = smov 128   ;;  %s398_s18 = smov 8  }
  0x16   :  { %31 = dma.hbm_to_vmem [thread:$0]  %s457_s1, 2816, %s26_s12, [#allocation6], %s397_s17, %s397_s17, %s398_s18  }
  0x17   :  { %389 = dma.done.wait [#allocation3], 128  }
  0x18   :  { %390 = vsyncadd [#allocation3], 4294967168 }
  0x19   :  { %391 = dma.done.wait [#allocation6], 2816  }
  0x1a   :  { %392 = vsyncadd [#allocation6], 4294964480  ;;  %v399_v0 = vmov 0.0   ;;  %vm400_vm0 = vmmov 0   ;;  %v42_v1 = vld [vmem:[#allocation5 + $0x18] sm:$0xff]  ;;  %v41_v2 = vld [vmem:[#allocation5 + $0x10] sm:$0xff]  ;;  %v214_v27 = vlaneseq }
  0x1b   :  { %272 = vmatprep.subr.mxu0 %v399_v0  ;;  %280 = vmatprep.mubr.msk.f32.mxu0 %vm400_vm0, %v399_v0  ;;  %v59_v3 = vld [vmem:[#allocation5 + $0xa0] sm:$0xff]  ;;  %v40_v4 = vld [vmem:[#allocation5 + $0x8] sm:$0xff]  ;;  %v58_v5 = vld [vmem:[#allocation5 + $0x98] sm:$0xff]  ;;  %vm65_vm1 = vcmask 261120   ;;  %s401_s0 = smov [#allocation7]  }
  0x1c   :  { %283 = vmatprep.subr.mxu1 %v399_v0  ;;  %315 = vmatprep.mubr.msk.f32.mxu1 %vm400_vm0, %v399_v0  ;;  %v57_v6 = vld [vmem:[#allocation5 + $0x90] sm:$0xff]  ;;  %v39_v7 = vld [vmem:[#allocation5] sm:$0xff]  ;;  %v38_v8 = vld [vmem:[#allocation2] sm:$0xff]  ;;  %v215_v28 = vand.u32 127, %v214_v27  ;;  %s237_s1 = sshll.u32 %s401_s0, 4  ;;  %s238_s1 = int_to_ptr.vmem [resolvable:$true] %s237_s1 }
  0x1d   :  { %273 = vmatpush3.msra.mxu0 %v42_v1  ;;  %284 = vmatpush3.msra.mxu1 %v59_v3  ;;  %v56_v9 = vld [vmem:[#allocation5 + $0x88] sm:$0xff]  ;;  %v55_v10 = vld [vmem:[#allocation5 + $0x80] sm:$0xff]  ;;  %v54_v11 = vld [vmem:[#allocation5 + $0x78] sm:$0xff]  ;;  %s369_s21 = scalar_lea.vmem %s238_s1, 128  ;;  %p374_p11 = scmp.lt.s32.totalorder %s238_s1, %s238_s1 }
  0x1e   :  { %274 = vmatprep.subr.mxu0 %v399_v0  ;;  %285 = vmatprep.subr.mxu1 %v399_v0  ;;  %v53_v12 = vld [vmem:[#allocation5 + $0x70] sm:$0xff]  ;;  %v52_v13 = vld [vmem:[#allocation5 + $0x68] sm:$0xff]  ;;  %v51_v14 = vld [vmem:[#allocation5 + $0x60] sm:$0xff]  ;;  %vm216_vm2 = vcmp.ge.s32.totalorder %v215_v28, 8  ;;  %vm217_vm3 = vcmp.lt.s32.totalorder %v215_v28, 12  ;;  %p370_p10 = scmp.ne.s32.totalorder %s238_s1, %s369_s21  ;;  %p375_p12 = scmp.lt.s32.totalorder %s369_s21, %s369_s21 }
  0x1f   :  { %275 = vmatpush3.msra.mxu0 %v41_v2  ;;  %286 = vmatpush3.msra.mxu1 %v58_v5  ;;  %v50_v15 = vld [vmem:[#allocation5 + $0x58] sm:$0xff]  ;;  %v49_v16 = vld [vmem:[#allocation5 + $0x50] sm:$0xff]  ;;  %v48_v17 = vld [vmem:[#allocation5 + $0x48] sm:$0xff] }
  0x20   :  { %276 = vmatprep.subr.mxu0 %v399_v0  ;;  %287 = vmatprep.subr.mxu1 %v399_v0  ;;  %v47_v18 = vld [vmem:[#allocation5 + $0x40] sm:$0xff]  ;;  %v46_v19 = vld [vmem:[#allocation5 + $0x38] sm:$0xff]  ;;  %v45_v20 = vld [vmem:[#allocation5 + $0x30] sm:$0xff]  ;;  %p376_p13 = por %p375_p12, %p374_p11 }
  0x21   :  { %277 = vmatpush3.msra.mxu0 %v40_v4  ;;  %288 = vmatpush3.msra.mxu1 %v57_v6  ;;  %v44_v21 = vld [vmem:[#allocation5 + $0x28] sm:$0xff]  ;;  %v247_v22 = vld [vmem:[#allocation5 + $0x20] ss:$0 sm:$0xff]  ;;  %vm445_vm4 = vmand %vm216_vm2, %vm217_vm3 }
  0x22   :  { %278 = vmatprep.subr.mxu0 %v399_v0  ;;  %289 = vmatprep.subr.mxu1 %v399_v0  ;;  %v249_v29 = vld [vmem:[#allocation5 + $0xa8] ss:$0 sm:$0xff]  ;;  %p377_p0 = pnand %p376_p13, %p370_p10 }
  0x23   :  { %279 = vmatpush3.msra.mxu0 %v39_v7  ;;  %290 = vmatpush3.msra.mxu1 %v56_v9 }
  0x24   :  { %281 = vmatmul.mubr.msk.f32.vlgmr.msra.gmra.mxu0 %vm65_vm1, %v38_v8  ;;  %291 = vmatprep.subr.mxu1 %v399_v0 }
  0x25   :  { %292 = vmatpush3.msra.mxu1 %v55_v10 }
  0x26   :  { %293 = vmatprep.subr.mxu1 %v399_v0 }
  0x27   :  { %294 = vmatpush3.msra.mxu1 %v54_v11 }
  0x28   :  { %295 = vmatprep.subr.mxu1 %v399_v0 }
  0x29   :  { %296 = vmatpush3.msra.mxu1 %v53_v12 }
  0x2a   :  { %297 = vmatprep.subr.mxu1 %v399_v0 }
  0x2b   :  { %298 = vmatpush3.msra.mxu1 %v52_v13 }
  0x2c   :  { %299 = vmatprep.subr.mxu1 %v399_v0 }
  0x2d   :  { %300 = vmatpush3.msra.mxu1 %v51_v14 }
  0x2e   :  { %301 = vmatprep.subr.mxu1 %v399_v0 }
  0x2f   :  { %302 = vmatpush3.msra.mxu1 %v50_v15 }
  0x30   :  { %303 = vmatprep.subr.mxu1 %v399_v0 }
  0x31   :  { %304 = vmatpush3.msra.mxu1 %v49_v16 }
  0x32   :  { %305 = vmatprep.subr.mxu1 %v399_v0 }
  0x33   :  { %306 = vmatpush3.msra.mxu1 %v48_v17 }
  0x34   :  { %307 = vmatprep.subr.mxu1 %v399_v0 }
  0x35   :  { %308 = vmatpush3.msra.mxu1 %v47_v18 }
  0x36   :  { %309 = vmatprep.subr.mxu1 %v399_v0 }
  0x37   :  { %310 = vmatpush3.msra.mxu1 %v46_v19 }
  0x38   :  { %311 = vmatprep.subr.mxu1 %v399_v0 }
  0x39   :  { %312 = vmatpush3.msra.mxu1 %v45_v20 }
  0x3a   :  { %313 = vmatprep.subr.mxu1 %v399_v0 }
  0x3b   :  { %314 = vmatpush3.msra.mxu1 %v44_v21 }
  0xe4   :  { %v135_v23 = vpop.f32.mrf.mxu0 }
  0xe5   :  { %v136_v24 = vadd.f32 %v247_v22, %v135_v23 }
  0xe6   :  { %v282_v25 = vpop.f32.mrf.mxu0 }
  0xe7   :  { %v139_v26 = vmax.f32 %v136_v24, 0.0 }
  0xe9   :  { %316 = vmatmul.mubr.f32.vlgmr.msra.gmra.mxu1 %v139_v26 }
 0x1a9   :  { %v210_v30 = vpop.f32.mrf.mxu1 }
 0x1aa   :  { %v211_v32 = vadd.f32 %v249_v29, %v210_v30 }
 0x1ab   :  { %v317_v33 = vpop.f32.mrf.mxu1 }
 0x1ac   :  { %v219_v34 = vsel %vm445_vm4, %v211_v32, -inf }
 0x1ad   :  { %220 = vmax.xlane.f32.xlu0 %v219_v34 }
 0x236   :  { %v221_v35 = vpop.xlane.xlu0 %220 }
 0x237   :  { %v222_v36 = vsub.f32 %v219_v34, %v221_v35 }
 0x239   :  { %v223_v37 = vmul.f32 1.442695, %v222_v36 }
 0x23b   :  { %325 = vpow2.f32 %v223_v37 }
 0x248   :  { %v326_v38 = vpop.eup %325 }
 0x249   :  { %225 = vadd.xlane.f32.xlu0 %v326_v38 }
 0x2d2   :  { %v226_v39 = vpop.xlane.xlu0 %225 }
 0x2d3   :  { %327 = vrcp.f32 %v226_v39 }
 0x2e0   :  { %v328_v40 = vpop.eup %327 }
 0x2e1   :  { %v228_v41 = vmul.f32 %v328_v40, %v326_v38 }
 0x2e3   :  { %v229_v42 = vsel %vm445_vm4, %v228_v41, %v211_v32 }
 0x2e4   :  { %230 = vst [vmem:[#allocation7] sm:$0xff] %v229_v42 }
 0x2e5   :  { %380 = shalt.err (!%p377_p0)
}
 0x2e6   :  { %240 = dma.vmem_to_hbm [thread:$0]  %s238_s1, 128, %s458_s2, [#allocation4]  }
 0x2e7   :  { %393 = dma.done.wait [#allocation4], 128  }
 0x2e8   :  { %394 = vsyncadd [#allocation4], 4294967168 }
 0x2e9   :  { %244 = vsyncpa [#allocation3], 1 }
 0x2ea   :  { %245 = vsyncpa [#allocation6], 1 }
 0x2eb   :  { %246 = vsyncpa [#allocation4], 1 }

</bundles_post_ra>
